<compile_context>
chip_gen: v5e
topology: v5e:2x2
jax: 0.10.0
libtpu: 0.0.40
codegen_flags: <defaults>
</compile_context>

<pallas_src>
import functools
import math
from typing import NamedTuple

import jax
import jax.numpy as jnp
from jax import lax
from jax.experimental import pallas as pl
from jax.experimental.pallas import tpu as pltpu


# ----------------------------------------------------------------------------
# Chip detection (host-side, best-effort; falls back to conservative defaults).
# ----------------------------------------------------------------------------
class _ChipTraits(NamedTuple):
    kind: str
    is_v7: bool
    has_bf16_eup: bool
    vmem_cap_bytes: int


def _chip_traits() -> _ChipTraits:
    kind = ""
    try:
        dev = jax.devices()[0]
        if dev.platform == "tpu":
            kind = str(dev.device_kind).lower()
    except Exception:
        pass
    is_v7 = "v7" in kind
    # bf16 EUP/VPU exist on v6e/v7x; v5e (and unknown) -> keep exp math in f32.
    has_bf16_eup = ("v6" in kind) or is_v7
    vmem_cap = None
    try:
        info = pltpu.get_tpu_info()
        vmem_cap = int(getattr(info, "vmem_capacity_bytes", 0)) or None
    except Exception:
        vmem_cap = None
    if vmem_cap is None:
        # v7x has 64 MiB per TC; v5e/v6e have 128 MiB. Unknown -> conservative.
        vmem_cap = (64 << 20) if (is_v7 or not kind) else (128 << 20)
    return _ChipTraits(kind, is_v7, has_bf16_eup, vmem_cap)


# ----------------------------------------------------------------------------
# Kernels
# ----------------------------------------------------------------------------
def _single_kv_kernel(q_ref, k_ref, v_ref, o_ref, *, n_heads, ch, scale2,
                      seq_len, needs_mask, mxu_dtype, exp_dtype, approx_recip):
    """All keys fit one tile: plain softmax, no online-softmax scratch."""
    H = n_heads
    tq = q_ref.shape[2]
    tk = k_ref.shape[2]

    # (hc -> H, ch) is a pure sublane-group re-index (ch alignment asserted).
    q = (q_ref[0].reshape(H, ch, tq) * scale2).astype(mxu_dtype)
    k = k_ref[0].reshape(H, ch, tk).astype(mxu_dtype)
    v = v_ref[0].reshape(H, ch, tk).astype(mxu_dtype)

    # scores[h, s, t] = sum_c k[h, c, s] * q[h, c, t]  (transpose-free).
    s = lax.dot_general(k, q, (((1,), (1,)), ((0,), (0,))),
                        preferred_element_type=jnp.float32)      # [H, tk, tq]
    if needs_mask:
        key_idx = lax.broadcasted_iota(jnp.int32, (tk, tq), 0)
        s = jnp.where((key_idx < seq_len)[None], s, -jnp.inf)

    m = jnp.max(s, axis=1, keepdims=True)                         # [H, 1, tq]
    p = jnp.exp((s - m).astype(exp_dtype))                        # EUP exp
    l = jnp.sum(p, axis=1, keepdims=True, dtype=jnp.float32)      # [H, 1, tq]

    # out[h, c, t] = sum_s v[h, c, s] * p[h, s, t]
    pv = lax.dot_general(v, p.astype(mxu_dtype), (((2,), (1,)), ((0,), (0,))),
                         preferred_element_type=jnp.float32)      # [H, ch, tq]
    inv_l = pl.reciprocal(l, approx=approx_recip)
    o_ref[0] = (pv * inv_l).reshape(H * ch, tq).astype(o_ref.dtype)


def _flash_kv_kernel(q_ref, k_ref, v_ref, o_ref,
                     qs_ref, m_ref, l_ref, acc_ref, *, n_heads, ch, scale2,
                     seq_len, needs_mask, mxu_dtype, exp_dtype, approx_recip):
    """Flash-style online softmax over kv tiles (grid axis 2 = reduction)."""
    H = n_heads
    tq = q_ref.shape[2]
    tk = k_ref.shape[2]
    ki = pl.program_id(2)

    @pl.when(ki == 0)
    def _init():
        # Fold the softmax scale into q once per q tile (and cast to the MXU
        # operand dtype once) instead of scaling the score block every step.
        q = q_ref[0].reshape(H, ch, tq)
        qs_ref[...] = (q * scale2).astype(qs_ref.dtype)
        m_ref[...] = jnp.full(m_ref.shape, -jnp.inf, dtype=m_ref.dtype)
        l_ref[...] = jnp.zeros(l_ref.shape, dtype=l_ref.dtype)
        acc_ref[...] = jnp.zeros(acc_ref.shape, dtype=acc_ref.dtype)

    k = k_ref[0].reshape(H, ch, tk).astype(mxu_dtype)
    v = v_ref[0].reshape(H, ch, tk).astype(mxu_dtype)

    s = lax.dot_general(k, qs_ref[...], (((1,), (1,)), ((0,), (0,))),
                        preferred_element_type=jnp.float32)      # [H, tk, tq]
    if needs_mask:
        key_idx = ki * tk + lax.broadcasted_iota(jnp.int32, (tk, tq), 0)
        s = jnp.where((key_idx < seq_len)[None], s, -jnp.inf)

    m_prev = m_ref[...]                                           # [H, 1, tq]
    m_new = jnp.maximum(m_prev, jnp.max(s, axis=1, keepdims=True))
    alpha = jnp.exp(m_prev - m_new)
    p = jnp.exp((s - m_new).astype(exp_dtype))                    # EUP exp
    l_ref[...] = alpha * l_ref[...] + jnp.sum(
        p, axis=1, keepdims=True, dtype=jnp.float32)

    pv = lax.dot_general(v, p.astype(mxu_dtype), (((2,), (1,)), ((0,), (0,))),
                         preferred_element_type=jnp.float32)      # [H, ch, tq]
    acc_ref[...] = alpha * acc_ref[...] + pv
    m_ref[...] = m_new

    @pl.when(ki == pl.num_programs(2) - 1)
    def _finalize():
        inv_l = pl.reciprocal(l_ref[...], approx=approx_recip)    # EUP slot
        out = acc_ref[...] * inv_l
        o_ref[0] = out.reshape(H * ch, tq).astype(o_ref.dtype)


# ----------------------------------------------------------------------------
# Wrapper
# ----------------------------------------------------------------------------
def _pick_tiles(padded_len, n_heads, chip):
    def _largest(l):
        for t in (512, 256, 128):
            if l % t == 0:
                return t
        return l  # unreachable: padded_len is a multiple of 128

    tq = _largest(padded_len)
    tk = _largest(padded_len)
    # Keep the per-step f32 score temporaries (s + p) within a generation-aware
    # budget so they fit the scoped-VMEM window without spilling.
    budget = (8 << 20) if chip.is_v7 else (32 << 20)
    while 2 * n_heads * tq * tk * 4 > budget and tk > 128:
        tk //= 2
    while 2 * n_heads * tq * tk * 4 > budget and tq > 128:
        tq //= 2
    return tq, tk


def qkv_attention(qkv, n_heads, *, q_tile=None, kv_tile=None,
                  use_bf16_matmul=False, approx_recip=True):
    """qkv: [N, 3*H*C, T] -> [N, H*C, T]  (matches QKVAttention.forward)."""
    bs, width, length = qkv.shape
    assert width % (3 * n_heads) == 0
    ch = width // (3 * n_heads)
    hc = n_heads * ch
    in_dtype = jnp.dtype(qkv.dtype)

    # (hc -> H, ch) reshape is only a free sublane re-index if ch is a multiple
    # of the dtype's sublane tile (8 for 4-byte, 16 for 2-byte, 32 for 1-byte).
    sublane = {4: 8, 2: 16, 1: 32}.get(in_dtype.itemsize, 8)
    assert ch % sublane == 0, (
        f"ch={ch} must be a multiple of {sublane} for dtype {in_dtype} "
        "(otherwise the per-head reshape forces relayout copies)")

    scale2 = 1.0 / math.sqrt(ch)  # = (ch**-0.25)**2, folded into q once

    chip = _chip_traits()
    mxu_dtype = (jnp.bfloat16
                 if (use_bf16_matmul or in_dtype == jnp.bfloat16)
                 else in_dtype)
    # bf16 exp only where the EUP supports it AND the PV operand is bf16
    # anyway (so no extra cast is introduced); f32 everywhere else.
    exp_dtype = (jnp.bfloat16
                 if (chip.has_bf16_eup and jnp.dtype(mxu_dtype) == jnp.bfloat16)
                 else jnp.float32)

    # ---- pad T to a multiple of 128 (lane-dense stores) and mask keys -------
    padded_len = max(128, ((length + 127) // 128) * 128)
    needs_mask = padded_len != length
    qkv_in = (jnp.pad(qkv, ((0, 0), (0, 0), (0, padded_len - length)))
              if needs_mask else qkv)

    # ---- tiles ---------------------------------------------------------------
    if q_tile is None or kv_tile is None:
        auto_tq, auto_tk = _pick_tiles(padded_len, n_heads, chip)
        tq = q_tile or auto_tq
        tk = kv_tile or auto_tk
    else:
        tq, tk = q_tile, kv_tile
    assert padded_len % tq == 0 and padded_len % tk == 0
    assert tq % 128 == 0 and tk % 128 == 0, "tiles must be lane-aligned (128)"

    # v7x: keep the parallel extent (bs * n_q_tiles) >= 2 so both TCs get work.
    if chip.is_v7 and q_tile is None:
        while bs * (padded_len // tq) < 2 and tq > 128:
            tq //= 2

    n_q = padded_len // tq
    n_kv = padded_len // tk

    # ---- VMEM budget (explicit limit so 16/32 MiB scoped defaults don't bite)
    in_isz = in_dtype.itemsize
    mxu_isz = jnp.dtype(mxu_dtype).itemsize
    exp_isz = jnp.dtype(exp_dtype).itemsize
    io_bytes = 2 * in_isz * (hc * tq + 2 * hc * tk + hc * tq)   # dbl-buffered io
    scratch_bytes = 0
    if n_kv > 1:
        scratch_bytes = (n_heads * ch * tq) * (4 + mxu_isz) \
                        + 2 * n_heads * 8 * tq * 4              # acc+qs, m+l
    score_bytes = n_heads * tk * tq * (4 + exp_isz)             # s (f32) + p
    vmem_needed = int(1.3 * (io_bytes + scratch_bytes + score_bytes)) + (4 << 20)
    vmem_limit = min(int(0.9 * chip.vmem_cap_bytes), max(32 << 20, vmem_needed))

    common = dict(n_heads=n_heads, ch=ch, scale2=scale2, seq_len=length,
                  needs_mask=needs_mask, mxu_dtype=mxu_dtype,
                  exp_dtype=exp_dtype, approx_recip=approx_recip)

    out_shape = jax.ShapeDtypeStruct((bs, hc, padded_len), qkv.dtype)

    if n_kv == 1:
        # Fast path: single kv tile, no online-softmax scratch.
        grid = (bs, n_q)
        in_specs = [
            pl.BlockSpec((1, hc, tq), lambda n, qi: (n, 0, qi)),
            pl.BlockSpec((1, hc, tk), lambda n, qi: (n, 1, 0)),
            pl.BlockSpec((1, hc, tk), lambda n, qi: (n, 2, 0)),
        ]
        out_specs = pl.BlockSpec((1, hc, tq), lambda n, qi: (n, 0, qi))
        scratch_shapes = []
        dims = ("parallel", "parallel")
        kernel = functools.partial(_single_kv_kernel, **common)
    else:
        grid = (bs, n_q, n_kv)  # kv (reduction) axis innermost / "arbitrary"
        in_specs = [
            pl.BlockSpec((1, hc, tq), lambda n, qi, ki: (n, 0, qi)),
            pl.BlockSpec((1, hc, tk), lambda n, qi, ki: (n, 1, ki)),
            pl.BlockSpec((1, hc, tk), lambda n, qi, ki: (n, 2, ki)),
        ]
        out_specs = pl.BlockSpec((1, hc, tq), lambda n, qi, ki: (n, 0, qi))
        scratch_shapes = [
            pltpu.VMEM((n_heads, ch, tq), mxu_dtype),    # q * scale (per q tile)
            pltpu.VMEM((n_heads, 1, tq), jnp.float32),   # running max m
            pltpu.VMEM((n_heads, 1, tq), jnp.float32),   # running sum l
            pltpu.VMEM((n_heads, ch, tq), jnp.float32),  # output accumulator
        ]
        dims = ("parallel", "parallel", "arbitrary")
        kernel = functools.partial(_flash_kv_kernel, **common)

    out = pl.pallas_call(
        kernel,
        out_shape=out_shape,
        grid_spec=pltpu.PrefetchScalarGridSpec(
            num_scalar_prefetch=0,
            grid=grid,
            in_specs=in_specs,
            out_specs=out_specs,
            scratch_shapes=scratch_shapes,
        ),
        compiler_params=pltpu.CompilerParams(
            dimension_semantics=dims,
            vmem_limit_bytes=vmem_limit,
        ),
    )(qkv_in, qkv_in, qkv_in)   # q/k/v are channel-blocks 0/1/2 of qkv itself

    if needs_mask:
        out = out[:, :, :length]
    return out


# ----------------------------------------------------------------------------
# Pure-JAX reference mirroring the PyTorch forward exactly.
# ----------------------------------------------------------------------------
def _reference(qkv, n_heads):
    bs, width, length = qkv.shape
    ch = width // (3 * n_heads)
    q, k, v = jnp.split(qkv, 3, axis=1)
    scale = 1.0 / math.sqrt(math.sqrt(ch))
    q = (q * scale).reshape(bs * n_heads, ch, length)
    k = (k * scale).reshape(bs * n_heads, ch, length)
    v = v.reshape(bs * n_heads, ch, length)
    w = jnp.einsum("bct,bcs->bts", q, k)
    w = jax.nn.softmax(w.astype(jnp.float32), axis=-1).astype(qkv.dtype)
    a = jnp.einsum("bts,bcs->bct", w, v)
    return a.reshape(bs, -1, length)


if __name__ == "__main__":
    key1, key2 = jax.random.split(jax.random.PRNGKey(0))

    # Case 1: small, non-128-aligned T -> padded + key-masked, single-kv-block
    # fast path.
    N, H, C, T = 2, 2, 8, 16                        # qkv width = 3*H*C = 48
    qkv1 = jax.random.normal(key1, (N, 3 * H * C, T), dtype=jnp.float32)
    out1 = jax.block_until_ready(qkv_attention(qkv1, n_heads=H))
    ref1 = _reference(qkv1, n_heads=H)
    assert out1.shape == (N, H * C, T), out1.shape
    err1 = float(jnp.max(jnp.abs(out1 - ref1)))
    assert err1 < 5e-3, f"fast path mismatch vs reference, max abs err {err1}"

    # Case 2: forced small tiles -> multi-kv-block flash path with padding and
    # key masking (exercises the online-softmax / accumulator code path).
    N2, H2, C2, T2 = 1, 2, 8, 200
    qkv2 = jax.random.normal(key2, (N2, 3 * H2 * C2, T2), dtype=jnp.float32)
    out2 = jax.block_until_ready(
        qkv_attention(qkv2, n_heads=H2, q_tile=128, kv_tile=128))
    ref2 = _reference(qkv2, n_heads=H2)
    assert out2.shape == (N2, H2 * C2, T2), out2.shape
    err2 = float(jnp.max(jnp.abs(out2 - ref2)))
    assert err2 < 5e-3, f"flash path mismatch vs reference, max abs err {err2}"

    print("KERNEL_OK")
</pallas_src>

<mosaic_0001>
module attributes {stable_mosaic.version = 11 : i64} {
  func.func @_single_kv_kernel(%arg0: i32, %arg1: i32, %arg2: memref<1x16x128xf32, #tpu.memory_space<vmem>>, %arg3: memref<1x16x128xf32, #tpu.memory_space<vmem>>, %arg4: memref<1x16x128xf32, #tpu.memory_space<vmem>>, %arg5: memref<1x16x128xf32, #tpu.memory_space<vmem>>) attributes {dimension_semantics = [#tpu.dimension_semantics<parallel>, #tpu.dimension_semantics<parallel>], iteration_bounds = array<i64: 2, 1>, scalar_prefetch = 0 : i64, scratch_operands = 0 : i64, tpu.core_type = #tpu.core_type<tc>, window_params = [{transform_indices = @transform_0, window_bounds = array<i64: 1, 16, 128>}, {transform_indices = @transform_1, window_bounds = array<i64: 1, 16, 128>}, {transform_indices = @transform_2, window_bounds = array<i64: 1, 16, 128>}, {transform_indices = @transform_3, window_bounds = array<i64: 1, 16, 128>}]} {
    %c0 = arith.constant 0 : index
    %c0_0 = arith.constant 0 : index
    %c0_1 = arith.constant 0 : index
    %0 = vector.load %arg2[%c0, %c0_0, %c0_1] : memref<1x16x128xf32, #tpu.memory_space<vmem>>, vector<1x16x128xf32>
    %1 = vector.shape_cast %0 : vector<1x16x128xf32> to vector<16x128xf32>
    %2 = vector.shape_cast %1 : vector<16x128xf32> to vector<2x8x128xf32>
    %cst = arith.constant 0.353553385 : f32
    %3 = vector.broadcast %cst : f32 to vector<2x8x128xf32>
    %4 = arith.mulf %2, %3 : vector<2x8x128xf32>
    %c0_2 = arith.constant 0 : index
    %c0_3 = arith.constant 0 : index
    %c0_4 = arith.constant 0 : index
    %5 = vector.load %arg3[%c0_2, %c0_3, %c0_4] : memref<1x16x128xf32, #tpu.memory_space<vmem>>, vector<1x16x128xf32>
    %6 = vector.shape_cast %5 : vector<1x16x128xf32> to vector<16x128xf32>
    %7 = vector.shape_cast %6 : vector<16x128xf32> to vector<2x8x128xf32>
    %c0_5 = arith.constant 0 : index
    %c0_6 = arith.constant 0 : index
    %c0_7 = arith.constant 0 : index
    %8 = vector.load %arg4[%c0_5, %c0_6, %c0_7] : memref<1x16x128xf32, #tpu.memory_space<vmem>>, vector<1x16x128xf32>
    %9 = vector.shape_cast %8 : vector<1x16x128xf32> to vector<16x128xf32>
    %10 = vector.shape_cast %9 : vector<16x128xf32> to vector<2x8x128xf32>
    %cst_8 = arith.constant dense<0.000000e+00> : vector<2x128x128xf32>
    %11 = tpu.matmul %7, %4, %cst_8 {dimension_numbers = #tpu.dot_dimension_numbers<[1], [1], [2], [2], [0, 0, 0, 2, 1, 2], [0], [0]>} : vector<2x8x128xf32>, vector<2x8x128xf32>, vector<2x128x128xf32> -> vector<2x128x128xf32>
    %12 = tpu.iota {dimensions = array<i32: 0>} : vector<128x128xi32>
    %c16_i32 = arith.constant 16 : i32
    %13 = vector.broadcast %c16_i32 : i32 to vector<128x128xi32>
    %14 = arith.cmpi slt, %12, %13 : vector<128x128xi32>
    %15 = vector.shape_cast %14 : vector<128x128xi1> to vector<1x128x128xi1>
    %cst_9 = arith.constant 0xFF800000 : f32
    %16 = vector.shape_cast %15 : vector<1x128x128xi1> to vector<1x128x128xi1>
    %17 = vector.broadcast %16 : vector<1x128x128xi1> to vector<2x128x128xi1>
    %18 = vector.broadcast %cst_9 : f32 to vector<2x128x128xf32>
    %19 = arith.select %17, %11, %18 : vector<2x128x128xi1>, vector<2x128x128xf32>
    %cst_10 = arith.constant dense<0xFF800000> : vector<2x128xf32>
    %20 = vector.multi_reduction <maximumf>, %19, %cst_10 [1] : vector<2x128x128xf32> to vector<2x128xf32>
    %21 = vector.shape_cast %20 : vector<2x128xf32> to vector<2x1x128xf32>
    %22 = vector.broadcast %21 : vector<2x1x128xf32> to vector<2x128x128xf32>
    %23 = arith.subf %19, %22 : vector<2x128x128xf32>
    %24 = math.exp %23 : vector<2x128x128xf32>
    %cst_11 = arith.constant dense<0.000000e+00> : vector<2x128xf32>
    %25 = vector.multi_reduction <add>, %24, %cst_11 [1] : vector<2x128x128xf32> to vector<2x128xf32>
    %26 = vector.shape_cast %25 : vector<2x128xf32> to vector<2x1x128xf32>
    %cst_12 = arith.constant dense<0.000000e+00> : vector<2x8x128xf32>
    %27 = tpu.matmul %10, %24, %cst_12 {dimension_numbers = #tpu.dot_dimension_numbers<[2], [1], [1], [2], [0, 0, 0, 1, 1, 2], [0], [0]>} : vector<2x8x128xf32>, vector<2x128x128xf32>, vector<2x8x128xf32> -> vector<2x8x128xf32>
    %28 = tpu.reciprocal %26 {approx = true} : vector<2x1x128xf32> -> vector<2x1x128xf32>
    %29 = vector.broadcast %28 : vector<2x1x128xf32> to vector<2x8x128xf32>
    %30 = arith.mulf %27, %29 : vector<2x8x128xf32>
    %31 = vector.shape_cast %30 : vector<2x8x128xf32> to vector<16x128xf32>
    %c0_13 = arith.constant 0 : index
    %c0_14 = arith.constant 0 : index
    %c0_15 = arith.constant 0 : index
    %32 = vector.load %arg5[%c0_13, %c0_14, %c0_15] : memref<1x16x128xf32, #tpu.memory_space<vmem>>, vector<1x16x128xf32>
    %33 = vector.shape_cast %32 : vector<1x16x128xf32> to vector<16x128xf32>
    %34 = vector.shape_cast %31 : vector<16x128xf32> to vector<1x16x128xf32>
    tpu.vector_store %arg5[%c0_13, %c0_14, %c0_15], %34 {strides = array<i32>} : memref<1x16x128xf32, #tpu.memory_space<vmem>>, vector<1x16x128xf32>,
    return
  }
  func.func @transform_0(%arg0: i32, %arg1: i32) -> (i32, i32, i32) {
    %c0_i32 = arith.constant 0 : i32
    %c0_i32_0 = arith.constant 0 : i32
    return %arg0, %c0_i32, %arg1 : i32, i32, i32
  }
  func.func @transform_1(%arg0: i32, %arg1: i32) -> (i32, i32, i32) {
    %c1_i32 = arith.constant 1 : i32
    %c0_i32 = arith.constant 0 : i32
    %c0_i32_0 = arith.constant 0 : i32
    return %arg0, %c1_i32, %c0_i32 : i32, i32, i32
  }
  func.func @transform_2(%arg0: i32, %arg1: i32) -> (i32, i32, i32) {
    %c2_i32 = arith.constant 2 : i32
    %c0_i32 = arith.constant 0 : i32
    %c0_i32_0 = arith.constant 0 : i32
    return %arg0, %c2_i32, %c0_i32 : i32, i32, i32
  }
  func.func @transform_3(%arg0: i32, %arg1: i32) -> (i32, i32, i32) {
    %c0_i32 = arith.constant 0 : i32
    %c0_i32_0 = arith.constant 0 : i32
    return %arg0, %c0_i32, %arg1 : i32, i32, i32
  }
}

</mosaic_0001>

<bundles_post_ra>
// kernel: tpu_custom_call.1
= control target key start
LH: loop header
LB: loop body
LE: loop exit
PB: predicated region body
PF: predicated region fallthrough
CT: control target
= control target key end

     0   :  { %s1625_s0 = inlined_call_operand.hbm [shape: f32[2,48,128], index: 0, kind: input, shape index: {}]   ;;  %s1626_s1 = inlined_call_operand.hbm [shape: f32[2,48,128], index: 1, kind: input, shape index: {}]   ;;  %s1627_s2 = inlined_call_operand.hbm [shape: f32[2,48,128], index: 2, kind: input, shape index: {}]   ;;  %s1628_s3 = inlined_call_operand.hbm [shape: f32[2,16,128], index: 3, kind: output, shape index: {}]  }
   0x1   :  { %1635 = sst [smem:[#allocation18_spill]] %s1626_s1 }
   0x2   :  { %8 = vsyncpa [#allocation3], 0 }
   0x3   :  { %10 = vsyncpa [#allocation3 + $0x1], 0 }
   0x4   :  { %11 = vsyncpa [#allocation6], 0 }
   0x5   :  { %13 = vsyncpa [#allocation6 + $0x1], 0 }
   0x6   :  { %14 = vsyncpa [#allocation4], 0 }
   0x7   :  { %16 = vsyncpa [#allocation4 + $0x1], 0  ;;  %s1413_s12 = smov 0   ;;  %s1415_s13 = smov 0  }
   0x8   :  { %s1417_s14 = smov 0   ;;  %s1419_s15 = smov 0  }
   0x9   :  { %s1421_s16 = smov 0   ;;  %s1423_s17 = smov 0  }
   0xa LB: > { %1636 = sst [smem:[#allocation12_spill]] %s1375_s14  ;;  %s1444_s18 = sadd.s32 4294967295, %s1387_s17   ;;  %s1387_s17 = sphi %s1423_s17, %s22_s17   ;;  %s1383_s16 = sphi %s1421_s16, %s1654_s16   ;;  %s1379_s15 = sphi %s1419_s15, %s1653_s15   ;;  %s1375_s14 = sphi %s1417_s14, %s1657_s14   ;;  %s1371_s13 = sphi %s1415_s13, %s1656_s13   ;;  %s1367_s12 = sphi %s1413_s12, %s1655_s12  }
   0xb   : > { %1637 = sst [smem:[#allocation13_spill]] %s1383_s16  ;;  %s1063_s19 = sadd.s32 4294967294, %s1387_s17  }
   0xc   : > { %1638 = sst [smem:[#allocation14_spill]] %s1387_s17  ;;  %s34_s20 = sadd.s32 1, %s1383_s16 }
   0xd   : > { %s43_s21 = sadd.s32 1, %s1375_s14  ;;  %p36_p0 = scmp.ge.s32.totalorder %s34_s20, 2 }
   0xe   : > { %p50_p1 = scmp.ne.s32.totalorder %s1375_s14, %s1371_s13  ;;  %p51_p2 = scmp.eq.s32.totalorder %s1387_s17, 0 }
   0xf   : > { %p56_p3 = scmp.ne.s32.totalorder %s1371_s13, %s1367_s12  ;;  %s1659_s20 = smov (%p36_p0, %s34_s20), 0 }
  0x10   : > { %1639 = sst [smem:[#allocation15_spill]] %s1659_s20  ;;  %p1456_p4 = por %p51_p2, %p50_p1 }
  0x11   : > { %p57_p5 = scmp.eq.s32.totalorder %s1444_s18, 0  ;;  %s38_s23 = ssub.s32 %s1383_s16, %s1659_s20 }
  0x12   : > { %p134_p6 = scmp.eq.s32.totalorder %s1444_s18, 1  ;;  %p41_p7 = scmp.eq.s32.totalorder %s38_s23, 0 }
  0x13   : > { %p1464_p8 = por %p57_p5, %p56_p3  ;;  %p140_p10 = scmp.eq.s32.totalorder %s1063_s19, 1 }
  0x14   : > { %p1468_p9 = por %p134_p6, %p50_p1  ;;  %p1065_p12 = scmp.ge.s32.totalorder %s1387_s17, 2 }
  0x15   : > { %s1473_s26 = scalar_select %p41_p7, %s1375_s14, %s43_s21  }
  0x16   : > { %p1475_p11 = por %p140_p10, %p56_p3  ;;  %p1140_p13 = scmp.lt.s32.totalorder %s1387_s17, 2 }
  0x17   : > { %1643 = sst [smem:[#allocation16_spill]] %s1473_s26  ;;  %s160_s28 = sand.u32 1, %s1375_s14  }
  0x18   : > { %s1644_s27 = scalar_select %p1475_p11, 1, 0 }
  0x19   : > { %s1482_s29 = sshll.u32 %s160_s28, 4  ;;  %s1485_s30 = smul.u32 48, %s1383_s16 }
  0x1a   : > { %1645 = sst [smem:[#allocation17_spill]] %s1644_s27  ;;  %p1489_p0 = pnand %p1140_p13, %p1456_p4 }
  0x1b   : > { %s183_s5 = sand.u32 1, %s1387_s17   ;;  %s1647_s1 = sld [smem:[#allocation18_spill]] }
  0x1c   : > { %s187_s10 = scalar_lea.vmem [#allocation5], %s1482_s29  ;;  %p1072_p1 = scmp.ge.s32.totalorder %s1387_s17, 1 }
  0x1d   : > { %s196_s11 = sshll.u32 %s187_s10, 4  ;;  %s184_s21 = scalar_lea.sflag [#allocation6], %s183_s5  ;;  %s197_s11 = int_to_ptr.vmem [resolvable:$true] %s196_s11 }
  0x1e   : > { %s1389_s22 = smov 128   ;;  %s1390_s23 = smov 8  }
  0x1f   : > { %p227_p2 = scmp.lt.s32.totalorder %s1387_s17, 3  ;;  %s164_s10 = scalar_lea.vmem [#allocation2], %s1482_s29 }
  0x20   : > { %s161_s5 = scalar_lea.sflag [#allocation3], %s160_s28  ;;  %s210_s26 = scalar_lea.vmem [#allocation7], %s1482_s29 }
  0x21   : > { %s972_s8 = scalar_lea.hbm %s1647_s1, %s1485_s30  ;;  %p1503_p3 = pnand %p1072_p1, %p227_p2 }
  0x22   : > { %s973_s9 = scalar_lea.hbm %s972_s8, 16  ;;  %s173_s1 = sshll.u32 %s164_s10, 4  ;;  %s174_s1 = int_to_ptr.vmem [resolvable:$true] %s173_s1 }
  0x23   : > { %s194_s19 = sshll.u32 %s973_s9, 4  ;;  %s170_s9 = scalar_lea.hbm %s1625_s0, %s1485_s30  ;;  %s195_s19 = int_to_ptr.hbm [resolvable:$true] %s194_s19 }
  0x24   : > { %1132 = dma.hbm_to_vmem [thread:$0]  (!%p1489_p0), %s195_s19, 256, %s197_s11, %s184_s21, %s1389_s22, %s1389_s22, %s1390_s23  }
  0x25   : > { %s171_s20 = sshll.u32 %s170_s9, 4  ;;  %s979_s19 = scalar_lea.hbm %s1627_s2, %s1485_s30  ;;  %s172_s20 = int_to_ptr.hbm [resolvable:$true] %s171_s20 }
  0x26   : > { %1129 = dma.hbm_to_vmem [thread:$0]  (!%p1489_p0), %s172_s20, 256, %s174_s1, %s161_s5, %s1389_s22, %s1389_s22, %s1390_s23  }
  0x27   : > { %s219_s14 = sshll.u32 %s210_s26, 4  ;;  %s980_s17 = scalar_lea.hbm %s979_s19, 32  ;;  %s220_s14 = int_to_ptr.vmem [resolvable:$true] %s219_s14 }
  0x28   : > { %s217_s27 = sshll.u32 %s980_s17, 4  ;;  %231 = sbr.rel (%p1503_p3) target bundleno = 672 (0x2a0), region = 32  ;;  %s218_s27 = int_to_ptr.hbm [resolvable:$true] %s217_s27 }
  0x29   : > { %1135 = dma.hbm_to_vmem [thread:$0]  (!%p1489_p0), %s218_s27, 256, %s220_s14, %s184_s21, %s1389_s22, %s1389_s22, %s1390_s23  }
  0x2a   : > { %s1524_s28 = sand.u32 (!%p1503_p3), 1, %s1371_s13  }
  0x2b   : > { %s1527_s1 = sshll.u32 (!%p1503_p3), %s1524_s28, 4  ;;  %s234_s16 = scalar_lea.sflag (!%p1503_p3), [#allocation3], %s1524_s28 }
  0x2c   : > { %s237_s20 = scalar_lea.vmem (!%p1503_p3), [#allocation2], %s1527_s1 }
  0x2d   : > { %1354 = dma.done.wait (%p1464_p8), %s234_s16, 256  }
  0x2e   : > { %1356 = vsyncadd (%p1464_p8), %s234_s16, 4294967040  ;;  %s243_s14 = sand.u32 1, %s1444_s18   ;;  %s247_s26 = scalar_lea.vmem [#allocation5], %s1527_s1 }
  0x2f   : > { %s244_s17 = scalar_lea.sflag [#allocation6], %s243_s14 }
  0x30   : > { %1358 = dma.done.wait (%p1464_p8), %s244_s17, 512  }
  0x31   : > { %1360 = vsyncadd (%p1464_p8), %s244_s17, 4294966784  ;;  %v295_v0 = vld [vmem:[%s247_s26] sm:$0xff]  ;;  %v296_v1 = vld [vmem:[%s247_s26 + $0x8] sm:$0xff]  ;;  %vm331_vm0 = vcmask 64512   ;;  %s257_s18 = scalar_lea.vmem [#allocation7], %s1527_s1  ;;  %s290_s24 = scalar_lea.vmem [#allocation8], %s1527_s1 }
  0x32   : > { %299 = vxpose.xlu0.b32.start.end [1/1] (short) %v295_v0, 128  ;;  %v291_v2 = vld [vmem:[%s237_s20] sm:$0xff]  ;;  %v292_v16 = vld [vmem:[%s237_s20 + $0x8] sm:$0xff]  ;;  %s1114_s27 = sshll.u32 %s1379_s15, 4  ;;  %s927_s21 = sshll.u32 %s290_s24, 4  ;;  %s928_s21 = int_to_ptr.vmem [resolvable:$true] %s927_s21 }
  0x33   : > { %v293_v3 = vmul.f32 0.35355338, %v291_v2  ;;  %v294_v17 = vmul.f32 0.35355338, %v292_v16  ;;  %s926_s4 = scalar_lea.hbm %s1628_s3, %s1114_s27  ;;  %s914_s23 = scalar_lea.sflag [#allocation4], %s1524_s28 }
  0x34   : > { %s929_s22 = sshll.u32 %s926_s4, 4  ;;  %s1321_s9 = scalar_lea.hbm %s1628_s3, 32  ;;  %s930_s22 = int_to_ptr.hbm [resolvable:$true] %s929_s22 }
  0x35   : > { %395 = vmatpush.msra.mxu0 %v293_v3  ;;  %1115 = vmatpush.msra.mxu2 %v293_v3  ;;  %s1315_s6 = sshra.s32 %s930_s22, 4  ;;  %s1316_s6 = int_to_ptr.hbm [resolvable:$true] %s1315_s6 }
  0x36   : > { %540 = vmatpush.msra.mxu1 %v294_v17  ;;  %1116 = vmatpush.msra.mxu3 %v294_v17  ;;  %s1317_s7 = scalar_lea.hbm %s1316_s6, 16  ;;  %p1322_p7 = scmp.lt.s32.totalorder %s1316_s6, %s1628_s3 }
  0x37   : > { %p1318_p4 = scmp.ne.s32.totalorder %s1316_s6, %s1317_s7  ;;  %p1323_p8 = scmp.lt.s32.totalorder %s1321_s9, %s1317_s7 }
  0x39   : > { %p1319_p5 = pnand %p1318_p4, %p1468_p9  ;;  %p1324_p10 = por %p1323_p8, %p1322_p7 }
  0x3b   : > { %p1320_p6 = pneg %p1319_p5 }
  0x3d   : > { %p1325_p13 = pnand %p1324_p10, %p1320_p6 }
  0xb2   : > { %445 = vxpose.xlu0.b32.start.end [1/1] (short) %v296_v1, 128  ;;  %v297_v1 = vld [vmem:[%s257_s18] sm:$0xff] }
  0xd6   : > { %v315_v4 = vpop.trf.xlu0 }
  0xd7   : > { %1077 = vmatmul.msk.f32.vlgmr.msra.gmra.mxu0 %vm331_vm0, %v315_v4 }
  0xde   : > { %v316_v5 = vpop.trf.xlu0 }
  0xdf   : > { %1078 = vmatmul.msk.f32.gmra.mxu0 %vm331_vm0, %v316_v5 }
  0xe6   : > { %v317_v6 = vpop.trf.xlu0 }
  0xe7   : > { %1079 = vmatmul.msk.f32.gmra.mxu0 %vm331_vm0, %v317_v6 }
  0xee   : > { %v318_v7 = vpop.trf.xlu0 }
  0xef   : > { %1080 = vmatmul.msk.f32.gmra.mxu0 %vm331_vm0, %v318_v7 }
  0xf6   : > { %v319_v8 = vpop.trf.xlu0 }
  0xf7   : > { %1081 = vmatmul.msk.f32.gmra.mxu0 %vm331_vm0, %v319_v8 }
  0xfe   : > { %v320_v9 = vpop.trf.xlu0 }
  0xff   : > { %1082 = vmatmul.msk.f32.gmra.mxu0 %vm331_vm0, %v320_v9 }
 0x106   : > { %v321_v10 = vpop.trf.xlu0 }
 0x107   : > { %1083 = vmatmul.msk.f32.gmra.mxu0 %vm331_vm0, %v321_v10 }
 0x10e   : > { %v322_v11 = vpop.trf.xlu0 }
 0x10f   : > { %1084 = vmatmul.msk.f32.gmra.mxu0 %vm331_vm0, %v322_v11 }
 0x116   : > { %v323_v12 = vpop.trf.xlu0 }
 0x117   : > { %1085 = vmatmul.msk.f32.gmra.mxu0 %vm331_vm0, %v323_v12 }
 0x11e   : > { %v324_v13 = vpop.trf.xlu0 }
 0x11f   : > { %1086 = vmatmul.msk.f32.gmra.mxu0 %vm331_vm0, %v324_v13 }
 0x126   : > { %v325_v14 = vpop.trf.xlu0 }
 0x127   : > { %1087 = vmatmul.msk.f32.vlgmr.msra.gmra.mxu2 %vm331_vm0, %v325_v14 }
 0x12e   : > { %v326_v15 = vpop.trf.xlu0 }
 0x12f   : > { %1088 = vmatmul.msk.f32.gmra.mxu2 %vm331_vm0, %v326_v15 }
 0x136   : > { %v327_v18 = vpop.trf.xlu0 }
 0x137   : > { %1089 = vmatmul.msk.f32.gmra.mxu2 %vm331_vm0, %v327_v18 }
 0x13e   : > { %v328_v19 = vpop.trf.xlu0 }
 0x13f   : > { %1090 = vmatmul.msk.f32.gmra.mxu2 %vm331_vm0, %v328_v19 }
 0x146   : > { %v329_v20 = vpop.trf.xlu0 }
 0x147   : > { %1091 = vmatmul.msk.f32.gmra.mxu2 %vm331_vm0, %v329_v20 }
 0x14e   : > { %v330_v21 = vpop.trf.xlu0 }
 0x14f   : > { %1092 = vmatmul.msk.f32.gmra.mxu2 %vm331_vm0, %v330_v21 }
 0x154   : > { %v397_v22 = vpop.f32.mrf.mxu0 }
 0x156   : > { %v461_v23 = vpop.trf.xlu0 }
 0x157   : > { %1093 = vmatmul.msk.f32.vlgmr.msra.gmra.mxu1 %vm331_vm0, %v461_v23 }
 0x15c   : > { %v400_v24 = vpop.f32.mrf.mxu0 }
 0x15d   : > { %v701_v25 = vmax.f32 %v397_v22, %v400_v24 }
 0x15e   : > { %v462_v26 = vpop.trf.xlu0 }
 0x15f   : > { %v702_v27 = vrot.slane %v701_v25, 4  ;;  %1094 = vmatmul.msk.f32.gmra.mxu1 %vm331_vm0, %v462_v26 }
 0x161   : > { %v703_v28 = vmax.f32 %v701_v25, %v702_v27 }
 0x163   : > { %v704_v29 = vrot.slane %v703_v28, 2 }
 0x164   : > { %v403_v30 = vpop.f32.mrf.mxu0 }
 0x165   : > { %v705_v31 = vmax.f32 %v703_v28, %v704_v29 }
 0x166   : > { %v463_v49 = vpop.trf.xlu0 }
 0x167   : > { %v706_v32 = vrot.slane %v705_v31, 1  ;;  %1095 = vmatmul.msk.f32.gmra.mxu1 %vm331_vm0, %v463_v49 }
 0x169   : > { %v707_v33 = vmax.f32 %v705_v31, %v706_v32 }
 0x16b   : > { %v730_v34 = vsub.f32 %v400_v24, %v707_v33  ;;  %v731_v35 = vsub.f32 -inf, %v707_v33  ;;  %v729_v36 = vsub.f32 %v397_v22, %v707_v33 }
 0x16c   : > { %v406_v37 = vpop.f32.mrf.mxu0 }
 0x16d   : > { %v763_v38 = vmul.f32 1.442695, %v730_v34  ;;  %v765_v39 = vmul.f32 1.442695, %v731_v35  ;;  %v761_v40 = vmul.f32 1.442695, %v729_v36 }
 0x16e   : > { %v464_v57 = vpop.trf.xlu0 }
 0x16f   : > { %1195 = vpow2.f32 %v763_v38  ;;  %1096 = vmatmul.msk.f32.gmra.mxu1 %vm331_vm0, %v464_v57 }
 0x170   : > { %1197 = vpow2.f32 %v765_v39 }
 0x171   : > { %1199 = vpow2.f32 %v761_v40 }
 0x174   : > { %v409_v41 = vpop.f32.mrf.mxu0 }
 0x175   : > { %v1196_v42 = vpop.eup %1195 }
 0x176   : > { %v1198_v43 = vpop.eup %1197  ;;  %v465_v63 = vpop.trf.xlu0 }
 0x177   : > { %v1200_v44 = vpop.eup %1199  ;;  %867 = vmatpush.msrb.mxu2 %v1198_v43  ;;  %1097 = vmatmul.msk.f32.gmra.mxu1 %vm331_vm0, %v465_v63  ;;  %v298_v63 = vld [vmem:[%s257_s18 + $0x8] sm:$0xff] }
 0x178   : > { %v825_v45 = vadd.f32 %v1200_v44, %v1196_v42 }
 0x179   : > { %868 = vmatpush.msrb.mxu2 %v1198_v43 }
 0x17a   : > { %v826_v46 = vadd.f32 %v1198_v43, %v825_v45 }
 0x17b   : > { %869 = vmatpush.msrb.mxu2 %v1198_v43 }
 0x17c   : > { %v412_v47 = vpop.f32.mrf.mxu0  ;;  %v827_v48 = vadd.f32 %v1198_v43, %v826_v46 }
 0x17d   : > { %870 = vmatpush.msrb.mxu2 %v1198_v43 }
 0x17e   : > { %v828_v50 = vadd.f32 %v1198_v43, %v827_v48  ;;  %v466_v4 = vpop.trf.xlu0 }
 0x17f   : > { %871 = vmatpush.msrb.mxu2 %v1198_v43  ;;  %1098 = vmatmul.msk.f32.gmra.mxu1 %vm331_vm0, %v466_v4 }
 0x180   : > { %v829_v51 = vadd.f32 %v1198_v43, %v828_v50 }
 0x181   : > { %872 = vmatpush.msrb.mxu2 %v1198_v43 }
 0x182   : > { %v830_v52 = vadd.f32 %v1198_v43, %v829_v51 }
 0x183   : > { %873 = vmatpush.msrb.mxu2 %v1198_v43 }
 0x184   : > { %v415_v53 = vpop.f32.mrf.mxu0  ;;  %v831_v54 = vadd.f32 %v1198_v43, %v830_v52 }
 0x185   : > { %874 = vmatpush.msrb.mxu2 %v1198_v43 }
 0x186   : > { %v832_v55 = vadd.f32 %v1198_v43, %v831_v54  ;;  %v467_v6 = vpop.trf.xlu0 }
 0x187   : > { %875 = vmatpush.msrb.mxu2 %v1198_v43  ;;  %1099 = vmatmul.msk.f32.gmra.mxu1 %vm331_vm0, %v467_v6 }
 0x188   : > { %v833_v56 = vadd.f32 %v1198_v43, %v832_v55 }
 0x189   : > { %876 = vmatpush.msrb.mxu2 %v1198_v43 }
 0x18a   : > { %v834_v58 = vadd.f32 %v1198_v43, %v833_v56 }
 0x18b   : > { %877 = vmatpush.msrb.mxu2 %v1198_v43 }
 0x18c   : > { %v418_v59 = vpop.f32.mrf.mxu0  ;;  %v835_v60 = vadd.f32 %v1198_v43, %v834_v58 }
 0x18d   : > { %878 = vmatpush.msrb.mxu2 %v1198_v43 }
 0x18e   : > { %v836_v61 = vadd.f32 %v1198_v43, %v835_v60  ;;  %v468_v8 = vpop.trf.xlu0 }
 0x18f   : > { %879 = vmatpush.msrb.mxu2 %v1198_v43  ;;  %1100 = vmatmul.msk.f32.gmra.mxu1 %vm331_vm0, %v468_v8 }
 0x190   : > { %v837_v62 = vadd.f32 %v1198_v43, %v836_v61 }
 0x191   : > { %880 = vmatpush.msrb.mxu2 %v1198_v43 }
 0x192   : > { %v838_v0 = vadd.f32 %v1198_v43, %v837_v62 }
 0x193   : > { %881 = vmatpush.msrb.mxu2 %v1196_v42 }
 0x194   : > { %v421_v2 = vpop.f32.mrf.mxu0  ;;  %v1569_v3 = vadd.f32 %v1198_v43, %v838_v0 }
 0x195   : > { %882 = vmatpush.msrb.mxu2 %v1200_v44 }
 0x196   : > { %883 = vmatmul.f32.vlgmr.msrb.gmra.mxu2 %v297_v1  ;;  %v469_v10 = vpop.trf.xlu0  ;;  %v840_v43 = vrot.slane %v1569_v3, 4 }
 0x197   : > { %1101 = vmatmul.msk.f32.gmra.mxu1 %vm331_vm0, %v469_v10 }
 0x198   : > { %v841_v46 = vadd.f32 %v840_v43, %v1569_v3 }
 0x19a   : > { %v842_v49 = vrot.slane %v841_v46, 2 }
 0x19c   : > { %v424_v5 = vpop.f32.mrf.mxu0  ;;  %v843_v52 = vadd.f32 %v842_v49, %v841_v46 }
 0x19e   : > { %v470_v12 = vpop.trf.xlu0  ;;  %v844_v56 = vrot.slane %v843_v52, 1 }
 0x19f   : > { %1102 = vmatmul.msk.f32.vlgmr.msra.gmra.mxu3 %vm331_vm0, %v470_v12 }
 0x1a0   : > { %v845_v59 = vadd.f32 %v844_v56, %v843_v52 }
 0x1a6   : > { %v471_v14 = vpop.trf.xlu0 }
 0x1a7   : > { %1103 = vmatmul.msk.f32.gmra.mxu3 %vm331_vm0, %v471_v14 }
 0x1aa   : > { %v427_v7 = vpop.f32.mrf.mxu2 }
 0x1ae   : > { %v472_v16 = vpop.trf.xlu0 }
 0x1af   : > { %1104 = vmatmul.msk.f32.gmra.mxu3 %vm331_vm0, %v472_v16 }
 0x1b2   : > { %v430_v9 = vpop.f32.mrf.mxu2 }
 0x1b6   : > { %v473_v19 = vpop.trf.xlu0 }
 0x1b7   : > { %1105 = vmatmul.msk.f32.gmra.mxu3 %vm331_vm0, %v473_v19 }
 0x1ba   : > { %v433_v11 = vpop.f32.mrf.mxu2 }
 0x1be   : > { %v474_v22 = vpop.trf.xlu0 }
 0x1bf   : > { %1106 = vmatmul.msk.f32.gmra.mxu3 %vm331_vm0, %v474_v22 }
 0x1c2   : > { %v436_v13 = vpop.f32.mrf.mxu2 }
 0x1c6   : > { %v475_v27 = vpop.trf.xlu0 }
 0x1c7   : > { %1107 = vmatmul.msk.f32.gmra.mxu3 %vm331_vm0, %v475_v27 }
 0x1ca   : > { %v439_v15 = vpop.f32.mrf.mxu2 }
 0x1ce   : > { %v476_v36 = vpop.trf.xlu0 }
 0x1cf   : > { %1108 = vmatmul.msk.f32.gmra.mxu3 %vm331_vm0, %v476_v36 }
 0x1d2   : > { %v442_v17 = vpop.f32.mrf.mxu2 }
 0x1d4   : > { %v542_v18 = vpop.f32.mrf.mxu1 }
 0x1dc   : > { %v545_v20 = vpop.f32.mrf.mxu1 }
 0x1dd   : > { %v722_v21 = vmax.f32 %v542_v18, %v545_v20 }
 0x1df   : > { %v723_v23 = vrot.slane %v722_v21, 4 }
 0x1e1   : > { %v724_v24 = vmax.f32 %v722_v21, %v723_v23 }
 0x1e3   : > { %v725_v25 = vrot.slane %v724_v24, 2 }
 0x1e4   : > { %v548_v42 = vpop.f32.mrf.mxu1 }
 0x1e5   : > { %v726_v26 = vmax.f32 %v724_v24, %v725_v25 }
 0x1e7   : > { %v727_v28 = vrot.slane %v726_v26, 1 }
 0x1e9   : > { %v728_v29 = vmax.f32 %v726_v26, %v727_v28 }
 0x1eb   : > { %v746_v30 = vsub.f32 %v545_v20, %v728_v29  ;;  %v747_v31 = vsub.f32 -inf, %v728_v29  ;;  %v745_v32 = vsub.f32 %v542_v18, %v728_v29 }
 0x1ec   : > { %v551_v53 = vpop.f32.mrf.mxu1 }
 0x1ed   : > { %v795_v33 = vmul.f32 1.442695, %v746_v30  ;;  %v797_v34 = vmul.f32 1.442695, %v747_v31  ;;  %v793_v35 = vmul.f32 1.442695, %v745_v32 }
 0x1ef   : > { %1201 = vpow2.f32 %v795_v33 }
 0x1f0   : > { %1203 = vpow2.f32 %v797_v34 }
 0x1f1   : > { %1205 = vpow2.f32 %v793_v35 }
 0x1f2   : > { %1207 = vrcp.f32 %v845_v59 }
 0x1f4   : > { %v554_v60 = vpop.f32.mrf.mxu1 }
 0x1f5   : > { %v1202_v37 = vpop.eup %1201 }
 0x1f6   : > { %v1204_v38 = vpop.eup %1203 }
 0x1f7   : > { %v1206_v39 = vpop.eup %1205  ;;  %887 = vmatpush.msrb.mxu3 %v1204_v38 }
 0x1f8   : > { %v846_v40 = vadd.f32 %v1206_v39, %v1202_v37  ;;  %v1208_v2 = vpop.eup %1207 }
 0x1f9   : > { %888 = vmatpush.msrb.mxu3 %v1204_v38 }
 0x1fa   : > { %v847_v41 = vadd.f32 %v1204_v38, %v846_v40 }
 0x1fb   : > { %889 = vmatpush.msrb.mxu3 %v1204_v38 }
 0x1fc   : > { %v848_v44 = vadd.f32 %v1204_v38, %v847_v41  ;;  %v557_v1 = vpop.f32.mrf.mxu1 }
 0x1fd   : > { %890 = vmatpush.msrb.mxu3 %v1204_v38 }
 0x1fe   : > { %v849_v45 = vadd.f32 %v1204_v38, %v848_v44 }
 0x1ff   : > { %891 = vmatpush.msrb.mxu3 %v1204_v38 }
 0x200   : > { %v850_v47 = vadd.f32 %v1204_v38, %v849_v45 }
 0x201   : > { %892 = vmatpush.msrb.mxu3 %v1204_v38 }
 0x202   : > { %v851_v48 = vadd.f32 %v1204_v38, %v850_v47 }
 0x203   : > { %893 = vmatpush.msrb.mxu3 %v1204_v38 }
 0x204   : > { %v852_v50 = vadd.f32 %v1204_v38, %v851_v48  ;;  %v560_v5 = vpop.f32.mrf.mxu1 }
 0x205   : > { %894 = vmatpush.msrb.mxu3 %v1204_v38 }
 0x206   : > { %v853_v51 = vadd.f32 %v1204_v38, %v852_v50 }
 0x207   : > { %895 = vmatpush.msrb.mxu3 %v1204_v38 }
 0x208   : > { %v854_v54 = vadd.f32 %v1204_v38, %v853_v51 }
 0x209   : > { %896 = vmatpush.msrb.mxu3 %v1204_v38 }
 0x20a   : > { %v855_v55 = vadd.f32 %v1204_v38, %v854_v54 }
 0x20b   : > { %897 = vmatpush.msrb.mxu3 %v1204_v38 }
 0x20c   : > { %v856_v57 = vadd.f32 %v1204_v38, %v855_v55  ;;  %v563_v6 = vpop.f32.mrf.mxu1 }
 0x20d   : > { %898 = vmatpush.msrb.mxu3 %v1204_v38 }
 0x20e   : > { %v857_v58 = vadd.f32 %v1204_v38, %v856_v57 }
 0x20f   : > { %899 = vmatpush.msrb.mxu3 %v1204_v38 }
 0x210   : > { %v858_v61 = vadd.f32 %v1204_v38, %v857_v58 }
 0x211   : > { %900 = vmatpush.msrb.mxu3 %v1204_v38 }
 0x212   : > { %v859_v62 = vadd.f32 %v1204_v38, %v858_v61 }
 0x213   : > { %901 = vmatpush.msrb.mxu3 %v1202_v37 }
 0x214   : > { %v860_v0 = vadd.f32 %v1204_v38, %v859_v62  ;;  %v566_v7 = vpop.f32.mrf.mxu1 }
 0x215   : > { %902 = vmatpush.msrb.mxu3 %v1206_v39 }
 0x216   : > { %903 = vmatmul.f32.vlgmr.msrb.gmra.mxu3 %v298_v63  ;;  %v861_v15 = vrot.slane %v860_v0, 4 }
 0x218   : > { %v862_v16 = vadd.f32 %v861_v15, %v860_v0 }
 0x219   : > { %v884_v3 = vpop.f32.mrf.mxu2 }
 0x21a   : > { %v909_v4 = vmul.f32 %v1208_v2, %v884_v3  ;;  %v863_v17 = vrot.slane %v862_v16, 2 }
 0x21c   : > { %911 = vst [vmem:[%s290_s24] sm:$0xff] %v909_v4  ;;  %v864_v18 = vadd.f32 %v863_v17, %v862_v16 }
 0x21e   : > { %v865_v19 = vrot.slane %v864_v18, 1 }
 0x220   : > { %v866_v20 = vadd.f32 %v865_v19, %v864_v18 }
 0x222   : > { %v569_v8 = vpop.f32.mrf.mxu3  ;;  %1209 = vrcp.f32 %v866_v20 }
 0x228   : > { %v1210_v21 = vpop.eup %1209 }
 0x22a   : > { %v572_v9 = vpop.f32.mrf.mxu3 }
 0x232   : > { %v575_v10 = vpop.f32.mrf.mxu3 }
 0x23a   : > { %v578_v11 = vpop.f32.mrf.mxu3 }
 0x242   : > { %v581_v12 = vpop.f32.mrf.mxu3 }
 0x24a   : > { %v584_v13 = vpop.f32.mrf.mxu3 }
 0x252   : > { %v587_v14 = vpop.f32.mrf.mxu3 }
 0x299   : > { %v904_v22 = vpop.f32.mrf.mxu3 }
 0x29a   : > { %v910_v23 = vmul.f32 %v1210_v21, %v904_v22 }
 0x29c   : > { %912 = vst [vmem:[%s290_s24 + $0x8] sm:$0xff] %v910_v23 }
 0x29d   : > { %1328 = shalt.err (!%p1325_p13)
}
 0x29e   : > { %s1391_s11 = smov 128   ;;  %s1392_s19 = smov 8  }
 0x29f   : > { %1124 = dma.vmem_to_hbm [thread:$0]  (%p1468_p9), %s928_s21, 256, %s930_s22, %s914_s23, %s1391_s11, %s1391_s11, %s1392_s19  }
 0x2a0 PF: > { %s1650_s1 = sld [smem:[#allocation14_spill]]  ;;  %s944_s16 = sand.u32 1, %s1367_s12  }
 0x2a1   : > { %p1137_p0 = pnand %p1065_p12, %p1475_p11  ;;  %s945_s20 = scalar_lea.sflag [#allocation4], %s944_s16 }
 0x2a3   : > { %p1138_p1 = pneg %p1137_p0 }
 0x2a5   : > { %1362 = dma.done.wait (%p1138_p1), %s945_s20, 256  }
 0x2a6   : > { %1364 = vsyncadd (%p1138_p1), %s945_s20, 4294967040  ;;  %s22_s17 = sadd.s32 1, %s1650_s1   ;;  %s1651_s14 = sld [smem:[#allocation12_spill]] }
 0x2a7   : > { %p19_p2 = scmp.ge.s32.totalorder %s22_s17, 4   ;;  %s1652_s26 = sld [smem:[#allocation16_spill]] }
 0x2a8   : > { %s1653_s15 = sld [smem:[#allocation13_spill]]  ;;  %s1655_s12 = smov %s1371_s13 }
 0x2a9   : > { %s1654_s16 = sld [smem:[#allocation15_spill]]  ;;  %21 = sbr.rel (!%p19_p2) target bundleno = 10 (0xa), region = 101 }
 0x2ac   : > { %s1656_s13 = smov %s1651_s14 }
 0x2ad   : > { %s1657_s14 = smov %s1652_s26 }
 0x2ae   :  { %951 = vsyncpa [#allocation3], 1 }
 0x2af   :  { %953 = vsyncpa [#allocation3 + $0x1], 1 }
 0x2b0   :  { %954 = vsyncpa [#allocation6], 1 }
 0x2b1   :  { %956 = vsyncpa [#allocation6 + $0x1], 1 }
 0x2b2   :  { %957 = vsyncpa [#allocation4], 1 }
 0x2b3   :  { %959 = vsyncpa [#allocation4 + $0x1], 1 }

</bundles_post_ra>
